<compile_context>
chip_gen: v7x
topology: tpu7x:2x2x1
jax: 0.10.0
libtpu: 0.0.40
codegen_flags: <defaults>
</compile_context>

<pallas_src>
import functools

import jax
import jax.numpy as jnp
from jax.experimental import pallas as pl
from jax.experimental.pallas import tpu as pltpu

LANES = 128   # uniform lane width of the packed weight slab / internal state
ALIGN = 16    # sublane alignment of slab sections (bf16 native tile is (16,128))


# ----------------------------------------------------------------------------
# Host-side weight packing
# ----------------------------------------------------------------------------
def _round16(n):
    return (n + ALIGN - 1) // ALIGN * ALIGN


def _build_layout(c):
    """Row layout of the packed [rows, 128] weight slab (all offsets % 16 == 0).

    Weight sections are sized to their REAL contraction length (rounded up to
    16 rows); padding rows are zero.  Bias sections hold the bias replicated
    across all 16 rows."""
    lay = {}
    off = 0

    def add(name, rows):
        nonlocal off
        r = _round16(rows)
        lay[name] = (off, r)
        off += r

    add("w1", 4 * c * 16)      # folded conv1 weight   [4C*H*W, 4*2C (lanes)]
    add("b1", ALIGN)
    add("w2a0", 4 * 2 * c)     # paired [W2 | W2@Wa0]  [4*2C, 2C (lanes)]
    add("b2a0", ALIGN)
    add("wb0", c)              # resblock-0 conv-b     [C, C (lanes)]
    add("bb0", ALIGN)
    for i in range(1, 5):      # resblocks 1..4 (1x1 convs)
        add(f"wa{i}", c)
        add(f"ba{i}", ALIGN)
        add(f"wb{i}", c)
        add(f"bb{i}", ALIGN)
    add("wf", c)               # final 1x1 conv        [C, OUT (lanes)]
    add("bf", ALIGN)
    lay["_total"] = off
    return lay


def _fold_conv1_weight(w1, c):
    """Fold the 3x3/stride2/pad1 head conv (4x4 spatial input -> 2x2 output) into
    a single matmul weight [4C*4*4, 4*2C].  Rows are ordered like the
    NCHW-flattened input x (ci, ih, iw); columns are (output position oh*2+ow,
    out-channel)."""
    c4, c2 = 4 * c, 2 * c
    wt = jnp.transpose(w1, (1, 2, 3, 0))                 # [4C, 3, 3, 2C]
    wp = jnp.zeros((c4, 6, 6, 4, c2), jnp.float32)       # padded 6x6 input grid
    for oh in range(2):
        for ow in range(2):
            pos = oh * 2 + ow
            wp = wp.at[:, oh * 2:oh * 2 + 3, ow * 2:ow * 2 + 3, pos, :].set(wt)
    wc = wp[:, 1:5, 1:5, :, :]                           # drop the pad-1 border
    return wc.reshape(c4 * 16, 4 * c2)


def init_params(key, in_channels, out_channels):
    """Deterministic parameters at the PyTorch shapes ([out_ch, in_ch, kh, kw])."""
    c = in_channels
    ks = jax.random.split(key, 26)
    s = 0.1
    p = {"w1": s * jax.random.normal(ks[0], (2 * c, 4 * c, 3, 3), jnp.float32),
         "b1": s * jax.random.normal(ks[1], (2 * c,), jnp.float32),
         "w2": s * jax.random.normal(ks[2], (c, 2 * c, 2, 2), jnp.float32),
         "b2": s * jax.random.normal(ks[3], (c,), jnp.float32)}
    idx = 4
    wa, ba, wb, bb = [], [], [], []
    for _ in range(5):
        wa.append(s * jax.random.normal(ks[idx], (c, c, 1, 1), jnp.float32)); idx += 1
        ba.append(s * jax.random.normal(ks[idx], (c,), jnp.float32)); idx += 1
        wb.append(s * jax.random.normal(ks[idx], (c, c, 1, 1), jnp.float32)); idx += 1
        bb.append(s * jax.random.normal(ks[idx], (c,), jnp.float32)); idx += 1
    p["wa"], p["ba"], p["wb"], p["bb"] = wa, ba, wb, bb
    p["wf"] = s * jax.random.normal(ks[idx], (out_channels, c, 1, 1), jnp.float32); idx += 1
    p["bf"] = s * jax.random.normal(ks[idx], (out_channels,), jnp.float32)
    return p


def pack_params(tp, in_channels, out_channels):
    """Pack every weight/bias (matmul layout, zero lane-padded) into one bf16 slab."""
    c = in_channels
    assert 4 * 2 * c <= LANES and c <= LANES and out_channels <= LANES
    assert 2 * c <= LANES and c + _round16(c) <= LANES
    lay = _build_layout(c)
    slab = jnp.zeros((lay["_total"], LANES), jnp.float32)

    def put_w(slab, name, mat):
        o, _ = lay[name]
        mat = jnp.asarray(mat, jnp.float32)
        return slab.at[o:o + mat.shape[0], 0:mat.shape[1]].set(mat)

    def put_b(slab, name, vec):
        o, r = lay[name]
        vec = jnp.asarray(vec, jnp.float32)[None, :]
        return slab.at[o:o + r, 0:vec.shape[1]].set(jnp.tile(vec, (r, 1)))

    w2 = jnp.transpose(tp["w2"], (2, 3, 1, 0)).reshape(4 * 2 * c, c)   # [8C, C]
    wa0 = tp["wa"][0][:, :, 0, 0].T                                    # [C, C]

    slab = put_w(slab, "w1", _fold_conv1_weight(tp["w1"], c))
    slab = put_b(slab, "b1", jnp.tile(tp["b1"], 4))                    # per-position bias
    slab = put_w(slab, "w2a0", jnp.concatenate([w2, w2 @ wa0], axis=1))
    slab = put_b(slab, "b2a0",
                 jnp.concatenate([tp["b2"], tp["b2"] @ wa0 + tp["ba"][0]]))
    slab = put_w(slab, "wb0", tp["wb"][0][:, :, 0, 0].T)
    slab = put_b(slab, "bb0", tp["bb"][0])
    for i in range(1, 5):
        slab = put_w(slab, f"wa{i}", tp["wa"][i][:, :, 0, 0].T)
        slab = put_b(slab, f"ba{i}", tp["ba"][i])
        slab = put_w(slab, f"wb{i}", tp["wb"][i][:, :, 0, 0].T)
        slab = put_b(slab, f"bb{i}", tp["bb"][i])
    slab = put_w(slab, "wf", tp["wf"][:, :, 0, 0].T)
    slab = put_b(slab, "bf", tp["bf"])
    return slab.astype(jnp.bfloat16), lay


# ----------------------------------------------------------------------------
# Pallas kernel
# ----------------------------------------------------------------------------
def mapping_kernel(x_ref, w_ref, o_ref, *, lay, c, out_channels, n,
                   inv_cnt, inv_cnt_m1):
    def wmat(name):                      # static, 16-aligned slice; bf16 -> f32
        o, r = lay[name]
        return w_ref[o:o + r, :].astype(jnp.float32)

    def bias(name):                      # replicated rows -> no sublane broadcast
        o, r = lay[name]
        rows = n if n <= r else 1        # fall back to broadcast for large N
        return w_ref[o:o + rows, :].astype(jnp.float32)

    k1 = lay["wf"][1]                    # padded K of the 1x1 convs (= round16(C))
    k2 = lay["w2a0"][1]                  # padded K of the head conv2 (= round16(8C))

    x = x_ref[...]                                                   # [N, 4C*16]

    # head conv1 (3x3, s2, p1) folded into one matmul + bias + LeakyReLU(0.2)
    h = jnp.dot(x, wmat("w1"), preferred_element_type=jnp.float32) + bias("b1")
    h = jnp.maximum(h, 0.2 * h)                                      # [N, 128]

    # head conv2 (2x2, s1) PAIRED with resblock-0 conv-a (shared LHS, no
    # activation in between): lanes [0,C) = y, lanes [C,2C) = resblock-0 pre-act.
    yc = jnp.dot(h[:, :k2], wmat("w2a0"),
                 preferred_element_type=jnp.float32) + bias("b2a0")
    ta = jnp.maximum(yc, 0.2 * yc)
    t = jnp.dot(ta[:, c:c + k1], wmat("wb0"),
                preferred_element_type=jnp.float32) + bias("bb0")
    y = 0.1 * t + yc          # lanes [C,2C) now hold dead values; never read below

    # resblocks 1..4 (1x1 convs).  LHS is sliced to the padded K lanes; the
    # weight padding rows are zero, so dead/zero lanes contribute exactly 0.
    for i in range(1, 5):
        t = jnp.dot(y[:, :k1], wmat(f"wa{i}"),
                    preferred_element_type=jnp.float32) + bias(f"ba{i}")
        t = jnp.maximum(t, 0.2 * t)
        t = jnp.dot(t[:, :k1], wmat(f"wb{i}"),
                    preferred_element_type=jnp.float32) + bias(f"bb{i}")
        y = 0.1 * t + y

    # final 1x1 conv; lanes >= out_channels of z are exactly zero.
    z = jnp.dot(y[:, :k1], wmat("wf"),
                preferred_element_type=jnp.float32) + bias("bf")

    # (z - mean) / var -- torch Tensor.var(): unbiased, pooled over all N*OUT
    # values.  Two-pass variance (masked to the real output lanes) avoids the
    # E[x^2]-E[x]^2 cancellation; one scalar reciprocal + VPU multiply.
    m = jnp.sum(z) * inv_cnt             # padded lanes of z are exactly zero
    col = jax.lax.broadcasted_iota(jnp.int32, z.shape, 1)
    d = jnp.where(col < out_channels, z - m, 0.0)
    v = jnp.sum(d * d) * inv_cnt_m1
    o_ref[...] = (z - m) * (1.0 / v)                                 # [N, 128]
    # TODO(synk): for large N, add a ("parallel",) row grid plus a two-pass
    # global mean/var finalize so v7x's second TensorCore is used; the last
    # resblock's conv-b could also be folded into the final conv (Wb4@Wf) to
    # shorten the dependent MXU chain by one more dispatch.


# ----------------------------------------------------------------------------
# Wrapper
# ----------------------------------------------------------------------------
def mapping_net_forward(x_father, x_mother, slab, lay, in_channels, out_channels):
    assert x_father.shape == x_mother.shape
    n, _, h, w = x_father.shape
    assert h == 4 and w == 4, "head collapses to 1x1 only for 4x4 spatial input"
    x = jnp.concatenate([x_father, x_mother], axis=1)                # [N, 4C, 4, 4]
    x_flat = x.reshape(n, -1).astype(jnp.float32)                    # [N, 4C*16]

    cnt = n * out_channels
    kernel = functools.partial(
        mapping_kernel, lay=lay, c=in_channels, out_channels=out_channels, n=n,
        inv_cnt=1.0 / cnt, inv_cnt_m1=1.0 / max(cnt - 1, 1))

    # Advisory cost (slight over-count: bias rows included in the matmul term).
    flops = 2 * n * lay["_total"] * LANES
    bytes_accessed = (x_flat.size * x_flat.dtype.itemsize
                      + slab.size * slab.dtype.itemsize
                      + n * LANES * 4)

    out_pad = pl.pallas_call(
        kernel,
        out_shape=jax.ShapeDtypeStruct((n, LANES), jnp.float32),
        in_specs=[pl.BlockSpec(memory_space=pltpu.MemorySpace.VMEM),
                  pl.BlockSpec(memory_space=pltpu.MemorySpace.VMEM)],
        out_specs=pl.BlockSpec(memory_space=pltpu.MemorySpace.VMEM),
        cost_estimate=pl.CostEstimate(flops=int(flops), transcendentals=0,
                                      bytes_accessed=int(bytes_accessed)),
    )(x_flat, slab)
    return out_pad[:, :out_channels]


# ----------------------------------------------------------------------------
# Pure-JAX reference (im2col path, independent of the folded/paired packing)
# ----------------------------------------------------------------------------
def reference_forward(x_father, x_mother, tp):
    hi = jax.lax.Precision.HIGHEST
    n = x_father.shape[0]
    x = jnp.concatenate([x_father, x_mother], axis=1)                # [N, 4C, 4, 4]
    xp = jnp.pad(x, ((0, 0), (0, 0), (1, 1), (1, 1)))
    c2 = tp["w1"].shape[0]
    h = jnp.zeros((n, c2, 2, 2), jnp.float32)
    for oh in range(2):
        for ow in range(2):
            patch = xp[:, :, 2 * oh:2 * oh + 3, 2 * ow:2 * ow + 3]
            val = jnp.einsum("ncij,ocij->no", patch, tp["w1"], precision=hi) + tp["b1"]
            h = h.at[:, :, oh, ow].set(val)
    h = jnp.maximum(h, 0.2 * h)
    y = jnp.einsum("ncij,ocij->no", h, tp["w2"], precision=hi) + tp["b2"]
    for i in range(5):
        t = jnp.dot(y, tp["wa"][i][:, :, 0, 0].T, precision=hi) + tp["ba"][i]
        t = jnp.maximum(t, 0.2 * t)
        t = jnp.dot(t, tp["wb"][i][:, :, 0, 0].T, precision=hi) + tp["bb"][i]
        y = 0.1 * t + y
    z = jnp.dot(y, tp["wf"][:, :, 0, 0].T, precision=hi) + tp["bf"]
    m = jnp.mean(z)
    v = jnp.var(z, ddof=1)   # torch Tensor.var() is unbiased; module divides by var
    return (z - m) / v


if __name__ == "__main__":
    # Shapes implied by the module: 4x4 spatial so the head reduces to 1x1
    # (3x3 s2 p1: 4 -> 2, then 2x2 s1: 2 -> 1) and the final squeeze is valid.
    C = 8            # in_channels
    OUT = 16         # out_channels
    N = 2            # batch
    H = W = 4        # spatial

    key = jax.random.PRNGKey(0)
    kf, km, kp = jax.random.split(key, 3)
    # each parent tensor carries in_channels*2 channels (cat -> in_channels*4)
    x_father = jax.random.normal(kf, (N, 2 * C, H, W), jnp.float32)
    x_mother = jax.random.normal(km, (N, 2 * C, H, W), jnp.float32)

    tparams = init_params(kp, C, OUT)
    # Weights are stored bf16 in the packed slab (halves the dominant DMA).
    # Round-trip the parameters through bf16 once so the f32 reference uses the
    # exact same weight values as the kernel -> the check isolates kernel math.
    tparams = jax.tree_util.tree_map(
        lambda a: a.astype(jnp.bfloat16).astype(jnp.float32), tparams)
    slab, lay = pack_params(tparams, C, OUT)

    fwd = jax.jit(lambda xf, xm, s: mapping_net_forward(xf, xm, s, lay, C, OUT))
    out = jax.block_until_ready(fwd(x_father, x_mother, slab))
    assert out.shape == (N, OUT), out.shape

    ref = jax.block_until_ready(reference_forward(x_father, x_mother, tparams))
    # Accumulation order differs (folded 512-K matmul, host-paired W2@Wa0 stored
    # in bf16, MXU f32 path vs HIGHEST-precision einsums), and the output is
    # amplified by 1/var; allow a modest tolerance.
    assert jnp.allclose(out, ref, atol=1e-2, rtol=1e-2), (out, ref)

    print("KERNEL_OK")
</pallas_src>

<mosaic_0001>
module attributes {stable_mosaic.version = 11 : i64} {
  func.func @mapping_kernel(%arg0: memref<2x512xf32, #tpu.memory_space<vmem>>, %arg1: memref<928x128xbf16, #tpu.memory_space<vmem>>, %arg2: memref<2x128xf32, #tpu.memory_space<vmem>>) attributes {dimension_semantics = [], scalar_prefetch = 0 : i64, scratch_operands = 0 : i64, tpu.core_type = #tpu.core_type<tc>} {
    %c0 = arith.constant 0 : index
    %c0_0 = arith.constant 0 : index
    %0 = vector.load %arg0[%c0, %c0_0] : memref<2x512xf32, #tpu.memory_space<vmem>>, vector<2x512xf32>
    %c0_1 = arith.constant 0 : index
    %c0_2 = arith.constant 0 : index
    %1 = vector.load %arg1[%c0_1, %c0_2] : memref<928x128xbf16, #tpu.memory_space<vmem>>, vector<512x128xbf16>
    %2 = arith.extf %1 : vector<512x128xbf16> to vector<512x128xf32>
    %cst = arith.constant dense<0.000000e+00> : vector<2x128xf32>
    %3 = tpu.matmul %0, %2, %cst {dimension_numbers = #tpu.dot_dimension_numbers<[1], [0], [0], [1], [0, 0, 1, 1], [], []>} : vector<2x512xf32>, vector<512x128xf32>, vector<2x128xf32> -> vector<2x128xf32>
    %c512 = arith.constant 512 : index
    %c0_3 = arith.constant 0 : index
    %4 = vector.load %arg1[%c512, %c0_3] : memref<928x128xbf16, #tpu.memory_space<vmem>>, vector<2x128xbf16>
    %5 = arith.extf %4 : vector<2x128xbf16> to vector<2x128xf32>
    %6 = arith.addf %3, %5 : vector<2x128xf32>
    %cst_4 = arith.constant 2.000000e-01 : f32
    %7 = vector.broadcast %cst_4 : f32 to vector<2x128xf32>
    %8 = arith.mulf %7, %6 : vector<2x128xf32>
    %9 = arith.maximumf %6, %8 : vector<2x128xf32>
    %10 = vector.extract_strided_slice %9 {offsets = [0, 0], sizes = [2, 64], strides = [1, 1]} : vector<2x128xf32> to vector<2x64xf32>
    %c528 = arith.constant 528 : index
    %c0_5 = arith.constant 0 : index
    %11 = vector.load %arg1[%c528, %c0_5] : memref<928x128xbf16, #tpu.memory_space<vmem>>, vector<64x128xbf16>
    %12 = arith.extf %11 : vector<64x128xbf16> to vector<64x128xf32>
    %cst_6 = arith.constant dense<0.000000e+00> : vector<2x128xf32>
    %13 = tpu.matmul %10, %12, %cst_6 {dimension_numbers = #tpu.dot_dimension_numbers<[1], [0], [0], [1], [0, 0, 1, 1], [], []>} : vector<2x64xf32>, vector<64x128xf32>, vector<2x128xf32> -> vector<2x128xf32>
    %c592 = arith.constant 592 : index
    %c0_7 = arith.constant 0 : index
    %14 = vector.load %arg1[%c592, %c0_7] : memref<928x128xbf16, #tpu.memory_space<vmem>>, vector<2x128xbf16>
    %15 = arith.extf %14 : vector<2x128xbf16> to vector<2x128xf32>
    %16 = arith.addf %13, %15 : vector<2x128xf32>
    %cst_8 = arith.constant 2.000000e-01 : f32
    %17 = vector.broadcast %cst_8 : f32 to vector<2x128xf32>
    %18 = arith.mulf %17, %16 : vector<2x128xf32>
    %19 = arith.maximumf %16, %18 : vector<2x128xf32>
    %20 = vector.extract_strided_slice %19 {offsets = [0, 8], sizes = [2, 16], strides = [1, 1]} : vector<2x128xf32> to vector<2x16xf32>
    %c608 = arith.constant 608 : index
    %c0_9 = arith.constant 0 : index
    %21 = vector.load %arg1[%c608, %c0_9] : memref<928x128xbf16, #tpu.memory_space<vmem>>, vector<16x128xbf16>
    %22 = arith.extf %21 : vector<16x128xbf16> to vector<16x128xf32>
    %cst_10 = arith.constant dense<0.000000e+00> : vector<2x128xf32>
    %23 = tpu.matmul %20, %22, %cst_10 {dimension_numbers = #tpu.dot_dimension_numbers<[1], [0], [0], [1], [0, 0, 1, 1], [], []>} : vector<2x16xf32>, vector<16x128xf32>, vector<2x128xf32> -> vector<2x128xf32>
    %c624 = arith.constant 624 : index
    %c0_11 = arith.constant 0 : index
    %24 = vector.load %arg1[%c624, %c0_11] : memref<928x128xbf16, #tpu.memory_space<vmem>>, vector<2x128xbf16>
    %25 = arith.extf %24 : vector<2x128xbf16> to vector<2x128xf32>
    %26 = arith.addf %23, %25 : vector<2x128xf32>
    %cst_12 = arith.constant 1.000000e-01 : f32
    %27 = vector.broadcast %cst_12 : f32 to vector<2x128xf32>
    %28 = arith.mulf %27, %26 : vector<2x128xf32>
    %29 = arith.addf %28, %16 : vector<2x128xf32>
    %30 = vector.extract_strided_slice %29 {offsets = [0, 0], sizes = [2, 16], strides = [1, 1]} : vector<2x128xf32> to vector<2x16xf32>
    %c640 = arith.constant 640 : index
    %c0_13 = arith.constant 0 : index
    %31 = vector.load %arg1[%c640, %c0_13] : memref<928x128xbf16, #tpu.memory_space<vmem>>, vector<16x128xbf16>
    %32 = arith.extf %31 : vector<16x128xbf16> to vector<16x128xf32>
    %cst_14 = arith.constant dense<0.000000e+00> : vector<2x128xf32>
    %33 = tpu.matmul %30, %32, %cst_14 {dimension_numbers = #tpu.dot_dimension_numbers<[1], [0], [0], [1], [0, 0, 1, 1], [], []>} : vector<2x16xf32>, vector<16x128xf32>, vector<2x128xf32> -> vector<2x128xf32>
    %c656 = arith.constant 656 : index
    %c0_15 = arith.constant 0 : index
    %34 = vector.load %arg1[%c656, %c0_15] : memref<928x128xbf16, #tpu.memory_space<vmem>>, vector<2x128xbf16>
    %35 = arith.extf %34 : vector<2x128xbf16> to vector<2x128xf32>
    %36 = arith.addf %33, %35 : vector<2x128xf32>
    %cst_16 = arith.constant 2.000000e-01 : f32
    %37 = vector.broadcast %cst_16 : f32 to vector<2x128xf32>
    %38 = arith.mulf %37, %36 : vector<2x128xf32>
    %39 = arith.maximumf %36, %38 : vector<2x128xf32>
    %40 = vector.extract_strided_slice %39 {offsets = [0, 0], sizes = [2, 16], strides = [1, 1]} : vector<2x128xf32> to vector<2x16xf32>
    %c672 = arith.constant 672 : index
    %c0_17 = arith.constant 0 : index
    %41 = vector.load %arg1[%c672, %c0_17] : memref<928x128xbf16, #tpu.memory_space<vmem>>, vector<16x128xbf16>
    %42 = arith.extf %41 : vector<16x128xbf16> to vector<16x128xf32>
    %cst_18 = arith.constant dense<0.000000e+00> : vector<2x128xf32>
    %43 = tpu.matmul %40, %42, %cst_18 {dimension_numbers = #tpu.dot_dimension_numbers<[1], [0], [0], [1], [0, 0, 1, 1], [], []>} : vector<2x16xf32>, vector<16x128xf32>, vector<2x128xf32> -> vector<2x128xf32>
    %c688 = arith.constant 688 : index
    %c0_19 = arith.constant 0 : index
    %44 = vector.load %arg1[%c688, %c0_19] : memref<928x128xbf16, #tpu.memory_space<vmem>>, vector<2x128xbf16>
    %45 = arith.extf %44 : vector<2x128xbf16> to vector<2x128xf32>
    %46 = arith.addf %43, %45 : vector<2x128xf32>
    %cst_20 = arith.constant 1.000000e-01 : f32
    %47 = vector.broadcast %cst_20 : f32 to vector<2x128xf32>
    %48 = arith.mulf %47, %46 : vector<2x128xf32>
    %49 = arith.addf %48, %29 : vector<2x128xf32>
    %50 = vector.extract_strided_slice %49 {offsets = [0, 0], sizes = [2, 16], strides = [1, 1]} : vector<2x128xf32> to vector<2x16xf32>
    %c704 = arith.constant 704 : index
    %c0_21 = arith.constant 0 : index
    %51 = vector.load %arg1[%c704, %c0_21] : memref<928x128xbf16, #tpu.memory_space<vmem>>, vector<16x128xbf16>
    %52 = arith.extf %51 : vector<16x128xbf16> to vector<16x128xf32>
    %cst_22 = arith.constant dense<0.000000e+00> : vector<2x128xf32>
    %53 = tpu.matmul %50, %52, %cst_22 {dimension_numbers = #tpu.dot_dimension_numbers<[1], [0], [0], [1], [0, 0, 1, 1], [], []>} : vector<2x16xf32>, vector<16x128xf32>, vector<2x128xf32> -> vector<2x128xf32>
    %c720 = arith.constant 720 : index
    %c0_23 = arith.constant 0 : index
    %54 = vector.load %arg1[%c720, %c0_23] : memref<928x128xbf16, #tpu.memory_space<vmem>>, vector<2x128xbf16>
    %55 = arith.extf %54 : vector<2x128xbf16> to vector<2x128xf32>
    %56 = arith.addf %53, %55 : vector<2x128xf32>
    %cst_24 = arith.constant 2.000000e-01 : f32
    %57 = vector.broadcast %cst_24 : f32 to vector<2x128xf32>
    %58 = arith.mulf %57, %56 : vector<2x128xf32>
    %59 = arith.maximumf %56, %58 : vector<2x128xf32>
    %60 = vector.extract_strided_slice %59 {offsets = [0, 0], sizes = [2, 16], strides = [1, 1]} : vector<2x128xf32> to vector<2x16xf32>
    %c736 = arith.constant 736 : index
    %c0_25 = arith.constant 0 : index
    %61 = vector.load %arg1[%c736, %c0_25] : memref<928x128xbf16, #tpu.memory_space<vmem>>, vector<16x128xbf16>
    %62 = arith.extf %61 : vector<16x128xbf16> to vector<16x128xf32>
    %cst_26 = arith.constant dense<0.000000e+00> : vector<2x128xf32>
    %63 = tpu.matmul %60, %62, %cst_26 {dimension_numbers = #tpu.dot_dimension_numbers<[1], [0], [0], [1], [0, 0, 1, 1], [], []>} : vector<2x16xf32>, vector<16x128xf32>, vector<2x128xf32> -> vector<2x128xf32>
    %c752 = arith.constant 752 : index
    %c0_27 = arith.constant 0 : index
    %64 = vector.load %arg1[%c752, %c0_27] : memref<928x128xbf16, #tpu.memory_space<vmem>>, vector<2x128xbf16>
    %65 = arith.extf %64 : vector<2x128xbf16> to vector<2x128xf32>
    %66 = arith.addf %63, %65 : vector<2x128xf32>
    %cst_28 = arith.constant 1.000000e-01 : f32
    %67 = vector.broadcast %cst_28 : f32 to vector<2x128xf32>
    %68 = arith.mulf %67, %66 : vector<2x128xf32>
    %69 = arith.addf %68, %49 : vector<2x128xf32>
    %70 = vector.extract_strided_slice %69 {offsets = [0, 0], sizes = [2, 16], strides = [1, 1]} : vector<2x128xf32> to vector<2x16xf32>
    %c768 = arith.constant 768 : index
    %c0_29 = arith.constant 0 : index
    %71 = vector.load %arg1[%c768, %c0_29] : memref<928x128xbf16, #tpu.memory_space<vmem>>, vector<16x128xbf16>
    %72 = arith.extf %71 : vector<16x128xbf16> to vector<16x128xf32>
    %cst_30 = arith.constant dense<0.000000e+00> : vector<2x128xf32>
    %73 = tpu.matmul %70, %72, %cst_30 {dimension_numbers = #tpu.dot_dimension_numbers<[1], [0], [0], [1], [0, 0, 1, 1], [], []>} : vector<2x16xf32>, vector<16x128xf32>, vector<2x128xf32> -> vector<2x128xf32>
    %c784 = arith.constant 784 : index
    %c0_31 = arith.constant 0 : index
    %74 = vector.load %arg1[%c784, %c0_31] : memref<928x128xbf16, #tpu.memory_space<vmem>>, vector<2x128xbf16>
    %75 = arith.extf %74 : vector<2x128xbf16> to vector<2x128xf32>
    %76 = arith.addf %73, %75 : vector<2x128xf32>
    %cst_32 = arith.constant 2.000000e-01 : f32
    %77 = vector.broadcast %cst_32 : f32 to vector<2x128xf32>
    %78 = arith.mulf %77, %76 : vector<2x128xf32>
    %79 = arith.maximumf %76, %78 : vector<2x128xf32>
    %80 = vector.extract_strided_slice %79 {offsets = [0, 0], sizes = [2, 16], strides = [1, 1]} : vector<2x128xf32> to vector<2x16xf32>
    %c800 = arith.constant 800 : index
    %c0_33 = arith.constant 0 : index
    %81 = vector.load %arg1[%c800, %c0_33] : memref<928x128xbf16, #tpu.memory_space<vmem>>, vector<16x128xbf16>
    %82 = arith.extf %81 : vector<16x128xbf16> to vector<16x128xf32>
    %cst_34 = arith.constant dense<0.000000e+00> : vector<2x128xf32>
    %83 = tpu.matmul %80, %82, %cst_34 {dimension_numbers = #tpu.dot_dimension_numbers<[1], [0], [0], [1], [0, 0, 1, 1], [], []>} : vector<2x16xf32>, vector<16x128xf32>, vector<2x128xf32> -> vector<2x128xf32>
    %c816 = arith.constant 816 : index
    %c0_35 = arith.constant 0 : index
    %84 = vector.load %arg1[%c816, %c0_35] : memref<928x128xbf16, #tpu.memory_space<vmem>>, vector<2x128xbf16>
    %85 = arith.extf %84 : vector<2x128xbf16> to vector<2x128xf32>
    %86 = arith.addf %83, %85 : vector<2x128xf32>
    %cst_36 = arith.constant 1.000000e-01 : f32
    %87 = vector.broadcast %cst_36 : f32 to vector<2x128xf32>
    %88 = arith.mulf %87, %86 : vector<2x128xf32>
    %89 = arith.addf %88, %69 : vector<2x128xf32>
    %90 = vector.extract_strided_slice %89 {offsets = [0, 0], sizes = [2, 16], strides = [1, 1]} : vector<2x128xf32> to vector<2x16xf32>
    %c832 = arith.constant 832 : index
    %c0_37 = arith.constant 0 : index
    %91 = vector.load %arg1[%c832, %c0_37] : memref<928x128xbf16, #tpu.memory_space<vmem>>, vector<16x128xbf16>
    %92 = arith.extf %91 : vector<16x128xbf16> to vector<16x128xf32>
    %cst_38 = arith.constant dense<0.000000e+00> : vector<2x128xf32>
    %93 = tpu.matmul %90, %92, %cst_38 {dimension_numbers = #tpu.dot_dimension_numbers<[1], [0], [0], [1], [0, 0, 1, 1], [], []>} : vector<2x16xf32>, vector<16x128xf32>, vector<2x128xf32> -> vector<2x128xf32>
    %c848 = arith.constant 848 : index
    %c0_39 = arith.constant 0 : index
    %94 = vector.load %arg1[%c848, %c0_39] : memref<928x128xbf16, #tpu.memory_space<vmem>>, vector<2x128xbf16>
    %95 = arith.extf %94 : vector<2x128xbf16> to vector<2x128xf32>
    %96 = arith.addf %93, %95 : vector<2x128xf32>
    %cst_40 = arith.constant 2.000000e-01 : f32
    %97 = vector.broadcast %cst_40 : f32 to vector<2x128xf32>
    %98 = arith.mulf %97, %96 : vector<2x128xf32>
    %99 = arith.maximumf %96, %98 : vector<2x128xf32>
    %100 = vector.extract_strided_slice %99 {offsets = [0, 0], sizes = [2, 16], strides = [1, 1]} : vector<2x128xf32> to vector<2x16xf32>
    %c864 = arith.constant 864 : index
    %c0_41 = arith.constant 0 : index
    %101 = vector.load %arg1[%c864, %c0_41] : memref<928x128xbf16, #tpu.memory_space<vmem>>, vector<16x128xbf16>
    %102 = arith.extf %101 : vector<16x128xbf16> to vector<16x128xf32>
    %cst_42 = arith.constant dense<0.000000e+00> : vector<2x128xf32>
    %103 = tpu.matmul %100, %102, %cst_42 {dimension_numbers = #tpu.dot_dimension_numbers<[1], [0], [0], [1], [0, 0, 1, 1], [], []>} : vector<2x16xf32>, vector<16x128xf32>, vector<2x128xf32> -> vector<2x128xf32>
    %c880 = arith.constant 880 : index
    %c0_43 = arith.constant 0 : index
    %104 = vector.load %arg1[%c880, %c0_43] : memref<928x128xbf16, #tpu.memory_space<vmem>>, vector<2x128xbf16>
    %105 = arith.extf %104 : vector<2x128xbf16> to vector<2x128xf32>
    %106 = arith.addf %103, %105 : vector<2x128xf32>
    %cst_44 = arith.constant 1.000000e-01 : f32
    %107 = vector.broadcast %cst_44 : f32 to vector<2x128xf32>
    %108 = arith.mulf %107, %106 : vector<2x128xf32>
    %109 = arith.addf %108, %89 : vector<2x128xf32>
    %110 = vector.extract_strided_slice %109 {offsets = [0, 0], sizes = [2, 16], strides = [1, 1]} : vector<2x128xf32> to vector<2x16xf32>
    %c896 = arith.constant 896 : index
    %c0_45 = arith.constant 0 : index
    %111 = vector.load %arg1[%c896, %c0_45] : memref<928x128xbf16, #tpu.memory_space<vmem>>, vector<16x128xbf16>
    %112 = arith.extf %111 : vector<16x128xbf16> to vector<16x128xf32>
    %cst_46 = arith.constant dense<0.000000e+00> : vector<2x128xf32>
    %113 = tpu.matmul %110, %112, %cst_46 {dimension_numbers = #tpu.dot_dimension_numbers<[1], [0], [0], [1], [0, 0, 1, 1], [], []>} : vector<2x16xf32>, vector<16x128xf32>, vector<2x128xf32> -> vector<2x128xf32>
    %c912 = arith.constant 912 : index
    %c0_47 = arith.constant 0 : index
    %114 = vector.load %arg1[%c912, %c0_47] : memref<928x128xbf16, #tpu.memory_space<vmem>>, vector<2x128xbf16>
    %115 = arith.extf %114 : vector<2x128xbf16> to vector<2x128xf32>
    %116 = arith.addf %113, %115 : vector<2x128xf32>
    %117 = vector.shape_cast %116 : vector<2x128xf32> to vector<1x2x128xf32>
    %cst_48 = arith.constant dense<0.000000e+00> : vector<1xf32>
    %118 = vector.multi_reduction <add>, %117, %cst_48 [1, 2] : vector<1x2x128xf32> to vector<1xf32>
    %119 = vector.shape_cast %118 : vector<1xf32> to vector<1x1x1xf32>
    %120 = vector.extract %119[0, 0, 0] : f32 from vector<1x1x1xf32>
    %cst_49 = arith.constant 3.125000e-02 : f32
    %121 = arith.mulf %120, %cst_49 : f32
    %122 = tpu.iota {dimensions = array<i32: 1>} : vector<2x128xi32>
    %c16_i32 = arith.constant 16 : i32
    %123 = vector.broadcast %c16_i32 : i32 to vector<2x128xi32>
    %124 = arith.cmpi slt, %122, %123 : vector<2x128xi32>
    %125 = vector.broadcast %121 : f32 to vector<2x128xf32>
    %126 = arith.subf %116, %125 : vector<2x128xf32>
    %cst_50 = arith.constant 0.000000e+00 : f32
    %127 = vector.broadcast %cst_50 : f32 to vector<2x128xf32>
    %128 = arith.select %124, %126, %127 : vector<2x128xi1>, vector<2x128xf32>
    %129 = arith.mulf %128, %128 : vector<2x128xf32>
    %130 = vector.shape_cast %129 : vector<2x128xf32> to vector<1x2x128xf32>
    %cst_51 = arith.constant dense<0.000000e+00> : vector<1xf32>
    %131 = vector.multi_reduction <add>, %130, %cst_51 [1, 2] : vector<1x2x128xf32> to vector<1xf32>
    %132 = vector.shape_cast %131 : vector<1xf32> to vector<1x1x1xf32>
    %133 = vector.extract %132[0, 0, 0] : f32 from vector<1x1x1xf32>
    %cst_52 = arith.constant 0.0322580636 : f32
    %134 = arith.mulf %133, %cst_52 : f32
    %135 = vector.broadcast %121 : f32 to vector<2x128xf32>
    %136 = arith.subf %116, %135 : vector<2x128xf32>
    %cst_53 = arith.constant 1.000000e+00 : f32
    %137 = arith.divf %cst_53, %134 : f32
    %138 = vector.broadcast %137 : f32 to vector<2x128xf32>
    %139 = arith.mulf %136, %138 : vector<2x128xf32>
    %c0_54 = arith.constant 0 : index
    %c0_55 = arith.constant 0 : index
    %140 = vector.load %arg2[%c0_54, %c0_55] : memref<2x128xf32, #tpu.memory_space<vmem>>, vector<2x128xf32>
    tpu.vector_store %arg2[%c0_54, %c0_55], %139 {strides = array<i32>} : memref<2x128xf32, #tpu.memory_space<vmem>>, vector<2x128xf32>,
    return
  }
}

</mosaic_0001>

<bundles_post_ra>
// kernel: _lambda_.1
= control target key start
LH: loop header
LB: loop body
LE: loop exit
PB: predicated region body
PF: predicated region fallthrough
CT: control target
= control target key end

     0   :  { %v148_v3 = vlaneseq  ;;  %v1845_v6 = vmov 1983009808   ;;  %s2105_s0 = inlined_call_operand.vmem [shape: f32[2,512], index: 0, kind: input, shape index: {}]   ;;  %s2106_s1 = inlined_call_operand.vmem [shape: bf16[928,128], index: 1, kind: input, shape index: {}]   ;;  %s2107_s2 = inlined_call_operand.hbm [shape: f32[2,128], index: 2, kind: output, shape index: {}]  }
   0x1   :  { %v1464_v0 = vld [vmem:[%s2106_s1 + $0x40] sm:$0xff]   ;;  %v1465_v5 = vld [vmem:[%s2106_s1 + $0x48] sm:$0xff]   ;;  %v146_v7 = vunpack.c.l.s4 %v1845_v6  ;;  %v1466_v13 = vld [vmem:[%s2106_s1 + $0x50] sm:$0xff]  }
   0x2   :  { %v1274_v1 = vld [vmem:[%s2106_s1] sm:$0xff]   ;;  %1701 = vmatprep.subr.bf16.mxu0 %v1464_v0  ;;  %v1481_v8 = vld [vmem:[%s2106_s1 + $0xc8] sm:$0xff]   ;;  %v149_v12 = vshrl.u32 %v148_v3, 7  ;;  %v1482_v14 = vld [vmem:[%s2106_s1 + $0xd0] sm:$0xff]  }
   0x3   :  { %v1480_v2 = vld [vmem:[%s2106_s1 + $0xc0] sm:$0xff]   ;;  %1703 = vmatpush3.bf16.msra.mxu0 %v1274_v1  ;;  %v1457_v9 = vld [vmem:[%s2106_s1 + $0x8] sm:$0xff]   ;;  %v147_v11 = vunpack.c.0.s8 %v146_v7  ;;  %v1458_v15 = vld [vmem:[%s2106_s1 + $0x10] sm:$0xff]  }
   0x4   :  { %1733 = vmatprep.subr.bf16.mxu1 %v1480_v2  ;;  %v1472_v4 = vld [vmem:[%s2106_s1 + $0x80] sm:$0xff]   ;;  %1705 = vmatprep.subr.bf16.mxu0 %v1465_v5  ;;  %v1473_v10 = vld [vmem:[%s2106_s1 + $0x88] sm:$0xff]   ;;  %v1474_v16 = vld [vmem:[%s2106_s1 + $0x90] sm:$0xff]  }
   0x5   :  { %1735 = vmatpush3.bf16.msra.mxu1 %v1472_v4  ;;  %v150_v17 = vsub.s32 %v147_v11, %v149_v12  ;;  %v1467_v18 = vld [vmem:[%s2106_s1 + $0x58] sm:$0xff]   ;;  %v12_v20 = vld [vmem:[%s2105_s0] sm:$0xff] }
   0x6   :  { %1737 = vmatprep.subr.bf16.mxu1 %v1481_v8  ;;  %v1483_v19 = vld [vmem:[%s2106_s1 + $0xd8] sm:$0xff]   ;;  %v144_v24 = vcombine.high %v12_v20, %v12_v20 }
   0x7   :  { %1707 = vmatpush3.bf16.msra.mxu0 %v1457_v9  ;;  %v1459_v21 = vld [vmem:[%s2106_s1 + $0x18] sm:$0xff]   ;;  %v151_v23 = vrot.slane %v12_v20, %v150_v17 }
   0x8   :  { %1709 = vmatprep.subr.bf16.mxu0 %v1466_v13  ;;  %v1475_v22 = vld [vmem:[%s2106_s1 + $0x98] sm:$0xff]  }
   0x9   :  { %1739 = vmatpush3.bf16.msra.mxu1 %v1473_v10 }
   0xa   :  { %1741 = vmatprep.subr.bf16.mxu1 %v1482_v14 }
   0xb   :  { %1711 = vmatpush3.bf16.msra.mxu0 %v1458_v15 }
   0xc   :  { %1713 = vmatprep.subr.bf16.mxu0 %v1467_v18 }
   0xd   :  { %1743 = vmatpush3.bf16.msra.mxu1 %v1474_v16 }
   0xe   :  { %1745 = vmatprep.subr.bf16.mxu1 %v1483_v19 }
   0xf   :  { %7 = vsyncpa [#allocation3], 0  ;;  %v1468_v25 = vld [vmem:[%s2106_s1 + $0x60] sm:$0xff]   ;;  %v159_v27 = vcombine.high %v151_v23, %v151_v23  ;;  %v158_v28 = vrot.slane %v144_v24, %v150_v17  ;;  %1715 = vmatpush3.bf16.msra.mxu0 %v1459_v21  ;;  %v1469_v32 = vld [vmem:[%s2106_s1 + $0x68] sm:$0xff]   ;;  %v1846_v44 = vmov 0.0|0.0   ;;  %vm1847_vm0 = vmmov 0  }
  0x10   :  { %v1484_v26 = vld [vmem:[%s2106_s1 + $0xe0] sm:$0xff]   ;;  %1717 = vmatprep.subr.bf16.mxu0 %v1468_v25  ;;  %v1485_v33 = vld [vmem:[%s2106_s1 + $0xe8] sm:$0xff]   ;;  %v1470_v36 = vld [vmem:[%s2106_s1 + $0x70] sm:$0xff]   ;;  %v1848_v49 = vmov 0.0   ;;  %vm325_vm1 = vcmask 523264   ;;  %s1849_s3 = smov 120  }
  0x11   :  { %1747 = vmatpush3.bf16.msra.mxu1 %v1475_v22  ;;  %v1460_v29 = vld [vmem:[%s2106_s1 + $0x20] sm:$0xff]   ;;  %v160_v31 = vcombine.high %v158_v28, %v158_v28  ;;  %229 = vmatprep.mubr.f32.mxu0 %v159_v27  ;;  %v1461_v34 = vld [vmem:[%s2106_s1 + $0x28] sm:$0xff]   ;;  %v1486_v37 = vld [vmem:[%s2106_s1 + $0xf0] sm:$0xff]   ;;  %vm410_vm2 = vcmask 130048   ;;  %vm1212_vm3 = vcmask 1041408   ;;  %s1850_s16 = smov [#allocation2]  }
  0x12   :  { %1749 = vmatprep.subr.bf16.mxu1 %v1484_v26  ;;  %v1476_v30 = vld [vmem:[%s2106_s1 + $0xa0] sm:$0xff]   ;;  %v1477_v35 = vld [vmem:[%s2106_s1 + $0xa8] sm:$0xff]   ;;  %v1462_v38 = vld [vmem:[%s2106_s1 + $0x30] sm:$0xff]   ;;  %s1254_s17 = sshll.u32 %s1850_s16, 4  ;;  %s1255_s17 = int_to_ptr.vmem [resolvable:$true] %s1254_s17 }
  0x13   :  { %299 = vmatprep.mubr.f32.mxu1 %v160_v31  ;;  %1719 = vmatpush3.bf16.msra.mxu0 %v1460_v29  ;;  %v1478_v39 = vld [vmem:[%s2106_s1 + $0xb0] sm:$0xff]   ;;  %v1471_v40 = vld [vmem:[%s2106_s1 + $0x78] sm:$0xff]   ;;  %v1488_v45 = vld [vmem:[%s2106_s1 + $0x108] sm:$0xff]   ;;  %s1821_s0 = scalar_lea.vmem %s1255_s17, 32  ;;  %p1826_p1 = scmp.lt.s32.totalorder %s1255_s17, %s1255_s17 }
  0x14   :  { %1721 = vmatprep.subr.bf16.mxu0 %v1469_v32  ;;  %v1487_v41 = vld [vmem:[%s2106_s1 + $0xf8] sm:$0xff]   ;;  %v1489_v46 = vld [vmem:[%s2106_s1 + $0x110] sm:$0xff]   ;;  %v1491_v48 = vld [vmem:[%s2106_s1 + $0x120] sm:$0xff]   ;;  %p1822_p0 = scmp.ne.s32.totalorder %s1255_s17, %s1821_s0  ;;  %p1827_p2 = scmp.lt.s32.totalorder %s1821_s0, %s1821_s0 }
  0x15   :  { %1751 = vmatpush3.bf16.msra.mxu1 %v1476_v30  ;;  %v1463_v42 = vld [vmem:[%s2106_s1 + $0x38] sm:$0xff]   ;;  %v141_v50 = vld [vmem:[%s2106_s1 + $0x100] sm:$0x1]  ;;  %v1492_v62 = vld [vmem:[%s2106_s1 + $0x130] sm:$0xff]  }
  0x16   :  { %1753 = vmatprep.subr.bf16.mxu1 %v1485_v33  ;;  %v1479_v43 = vld [vmem:[%s2106_s1 + $0xb8] sm:$0xff]   ;;  %v142_v52 = vunpack.c.l.bf16 %v141_v50  ;;  %v323_v63 = vld [vmem:[%s2106_s1 + $0x128] sm:$0x1]  ;;  %v1493_v8 = vld [vmem:[%s2106_s1 + $0x140] sm:$0xff]   ;;  %p1828_p3 = por %p1827_p2, %p1826_p1 }
  0x17   :  { %1723 = vmatpush3.bf16.msra.mxu0 %v1461_v34  ;;  %v1490_v47 = vld [vmem:[%s2106_s1 + $0x118] sm:$0xff]   ;;  %v324_v0 = vunpack.c.l.bf16 %v323_v63  ;;  %v1494_v16 = vld [vmem:[%s2106_s1 + $0x150] sm:$0xff]   ;;  %v489_v17 = vld [vmem:[%s2106_s1 + $0x148] sm:$0x1] }
  0x18   :  { %1725 = vmatprep.subr.bf16.mxu0 %v1470_v36  ;;  %v405_v9 = vld [vmem:[%s2106_s1 + $0x138] sm:$0x1]  ;;  %v490_v18 = vunpack.c.l.bf16 %v489_v17  ;;  %v1495_v24 = vld [vmem:[%s2106_s1 + $0x160] sm:$0xff]   ;;  %v1496_v32 = vld [vmem:[%s2106_s1 + $0x170] sm:$0xff]   ;;  %p1829_p4 = pnand %p1828_p3, %p1822_p0 }
  0x19   :  { %1755 = vmatpush3.bf16.msra.mxu1 %v1477_v35  ;;  %v406_v10 = vunpack.c.l.bf16 %v405_v9  ;;  %v570_v25 = vld [vmem:[%s2106_s1 + $0x158] sm:$0x1]  ;;  %v651_v33 = vld [vmem:[%s2106_s1 + $0x168] sm:$0x1]  ;;  %v1498_v50 = vld [vmem:[%s2106_s1 + $0x190] sm:$0xff]  }
  0x1a   :  { %1757 = vmatprep.subr.bf16.mxu1 %v1486_v37  ;;  %v571_v26 = vunpack.c.l.bf16 %v570_v25  ;;  %v652_v34 = vunpack.c.l.bf16 %v651_v33  ;;  %v1137_v17 = vld [vmem:[%s2106_s1 + $0x1c8] sm:$0x1] }
  0x1b   :  { %1727 = vmatpush3.bf16.msra.mxu0 %v1462_v38 }
  0x1c   :  { %1729 = vmatprep.subr.bf16.mxu0 %v1471_v40  ;;  %v1497_v40 = vld [vmem:[%s2106_s1 + $0x180] sm:$0xff]  }
  0x1d   :  { %1759 = vmatpush3.bf16.msra.mxu1 %v1478_v39 }
  0x1e   :  { %1761 = vmatprep.subr.bf16.mxu1 %v1487_v41  ;;  %v732_v41 = vld [vmem:[%s2106_s1 + $0x178] sm:$0x1] }
  0x1f   :  { %1731 = vmatpush3.bf16.msra.mxu0 %v1463_v42  ;;  %v733_v42 = vunpack.c.l.bf16 %v732_v41 }
  0x20   :  { %1764 = vmatprep.subr.bf16.mxu0 %v1846_v44 }
  0x21   :  { %1763 = vmatpush3.bf16.msra.mxu1 %v1479_v43 }
  0x22   :  { %1776 = vmatprep.subr.bf16.mxu1 %v1846_v44  ;;  %230 = vmatmul.mubr.f32.vlgmr.msra.gmra.mrb[0].mxu0 %v151_v23 }
  0x23   :  { %1766 = vmatpush3.bf16.msra.mxu0 %v1488_v45  ;;  %1627 = vmatprep.mubr.msk.f32.mxu0 %vm1847_vm0, %v1848_v49 }
  0x24   :  { %300 = vmatmul.mubr.f32.vlgmr.msra.gmra.mrb[0].mxu1 %v158_v28  ;;  %1767 = vmatprep.subr.bf16.mxu0 %v1846_v44 }
  0x25   :  { %1634 = vmatprep.mubr.msk.f32.mxu1 %vm1847_vm0, %v1848_v49  ;;  %1778 = vmatpush3.bf16.msra.mxu1 %v1492_v62 }
  0x26   :  { %1779 = vmatprep.subr.bf16.mxu1 %v1846_v44 }
  0x27   :  { %1769 = vmatpush3.bf16.msra.mxu0 %v1489_v46 }
  0x28   :  { %1770 = vmatprep.subr.bf16.mxu0 %v1846_v44 }
  0x2b   :  { %1772 = vmatpush3.bf16.msra.mxu0 %v1490_v47 }
  0x2c   :  { %1773 = vmatprep.subr.bf16.mxu0 %v1846_v44 }
  0x2f   :  { %1775 = vmatpush3.bf16.msra.mxu0 %v1491_v48 }
  0x30   :  { %1788 = vmatprep.subr.bf16.mxu0 %v1846_v44 }
  0xf5   :  { %v1534_v51 = vpop.f32.mrb[0].mxu0 }
  0xf6   :  { %v1535_v54 = vpop.f32.mrb[1].mxu0 }
  0xf7   :  { %v1569_v53 = vpop.f32.mrb[0].mxu1  ;;  %v1536_v56 = vadd.f32 %v1535_v54, %v1534_v51  ;;  %v813_v51 = vld [vmem:[%s2106_s1 + $0x188] sm:$0x1] }
  0xf8   :  { %v1570_v55 = vpop.f32.mrb[1].mxu1 }
  0xf9   :  { %v1571_v57 = vadd.f32 %v1570_v55, %v1569_v53  ;;  %v232_v58 = vadd.f32 %v1536_v56, %v142_v52  ;;  %v814_v52 = vunpack.c.l.bf16 %v813_v51 }
  0xfb   :  { %v302_v59 = vadd.f32 %v1571_v57, %v232_v58  ;;  %v1499_v58 = vld [vmem:[%s2106_s1 + $0x1a0] sm:$0xff]  }
  0xfd   :  { %v305_v60 = vmul.f32 0.2, %v302_v59 }
  0xff   :  { %v306_v61 = vmax.f32 %v302_v59, %v305_v60  ;;  %v894_v59 = vld [vmem:[%s2106_s1 + $0x198] sm:$0x1] }
 0x100   :  { %v895_v60 = vunpack.c.l.bf16 %v894_v59 }
 0x101   :  { %1628 = vmatmul.mubr.msk.f32.vlgmr.msra.gmra.mrb[2].mxu0 %vm325_vm1, %v306_v61 }
 0x102   :  { %1662 = vmatprep.mubr.msk.f32.mxu0 %vm1847_vm0, %v1848_v49  ;;  %1790 = vmatpush3.bf16.msra.mxu0 %v1496_v32 }
 0x103   :  { %1794 = vmatprep.subr.bf16.mxu0 %v1846_v44 }
 0x1d4   :  { %v395_v1 = vpop.f32.mrb[2].mxu0 }
 0x1d5   :  { %v396_v2 = vadd.f32 %v395_v1, %v324_v0  ;;  %v1629_v4 = vpop.f32.mrb[3].mxu0 }
 0x1d7   :  { %v399_v5 = vmul.f32 0.2, %v396_v2 }
 0x1d9   :  { %v400_v6 = vmax.f32 %v396_v2, %v399_v5 }
 0x1db   :  { %408 = vrot.lane.b32.xlu0 %v400_v6, %s1849_s3 }
 0x24d   :  { %v409_v7 = vpop.permute.xlu0 %408 }
 0x24e   :  { %1635 = vmatmul.mubr.msk.f32.vlgmr.msra.gmra.mrb[2].mxu1 %vm410_vm2, %v409_v7 }
 0x24f   :  { %1641 = vmatprep.mubr.msk.f32.mxu1 %vm1847_vm0, %v1848_v49  ;;  %1781 = vmatpush3.bf16.msra.mxu1 %v1493_v8 }
 0x250   :  { %1782 = vmatprep.subr.bf16.mxu1 %v1846_v44 }
 0x321   :  { %v479_v11 = vpop.f32.mrb[2].mxu1 }
 0x322   :  { %v480_v12 = vadd.f32 %v479_v11, %v406_v10  ;;  %v1636_v13 = vpop.f32.mrb[3].mxu1  ;;  %v1056_v10 = vld [vmem:[%s2106_s1 + $0x1b8] sm:$0x1] }
 0x323   :  { %v1057_v11 = vunpack.c.l.bf16 %v1056_v10 }
 0x324   :  { %v483_v14 = vmul.f32 0.1, %v480_v12 }
 0x326   :  { %v484_v15 = vadd.f32 %v483_v14, %v396_v2  ;;  %v1500_v2 = vld [vmem:[%s2106_s1 + $0x1b0] sm:$0xff]  }
 0x328   :  { %1642 = vmatmul.mubr.msk.f32.vlgmr.msra.gmra.mrb[4].mxu1 %vm410_vm2, %v484_v15 }
 0x329   :  { %1648 = vmatprep.mubr.msk.f32.mxu1 %vm1847_vm0, %v1848_v49  ;;  %1784 = vmatpush3.bf16.msra.mxu1 %v1494_v16 }
 0x32a   :  { %1785 = vmatprep.subr.bf16.mxu1 %v1846_v44 }
 0x3fb   :  { %v560_v19 = vpop.f32.mrb[4].mxu1 }
 0x3fc   :  { %v561_v20 = vadd.f32 %v560_v19, %v490_v18  ;;  %v1643_v21 = vpop.f32.mrb[5].mxu1  ;;  %v1138_v18 = vunpack.c.l.bf16 %v1137_v17 }
 0x3fe   :  { %v564_v22 = vmul.f32 0.2, %v561_v20 }
 0x400   :  { %v565_v23 = vmax.f32 %v561_v20, %v564_v22 }
 0x402   :  { %1649 = vmatmul.mubr.msk.f32.vlgmr.msra.gmra.mrb[6].mxu1 %vm410_vm2, %v565_v23 }
 0x403   :  { %1655 = vmatprep.mubr.msk.f32.mxu1 %vm1847_vm0, %v1848_v49  ;;  %1787 = vmatpush3.bf16.msra.mxu1 %v1495_v24 }
 0x404   :  { %1791 = vmatprep.subr.bf16.mxu1 %v1846_v44 }
 0x4d5   :  { %v641_v27 = vpop.f32.mrb[6].mxu1 }
 0x4d6   :  { %v642_v28 = vadd.f32 %v641_v27, %v571_v26  ;;  %v1650_v29 = vpop.f32.mrb[7].mxu1 }
 0x4d8   :  { %v645_v30 = vmul.f32 0.1, %v642_v28 }
 0x4da   :  { %v646_v31 = vadd.f32 %v645_v30, %v484_v15  ;;  %v1225_v30 = vand.u32 127, %v148_v3 }
 0x4dc   :  { %1656 = vmatmul.mubr.msk.f32.vlgmr.msra.gmra.mrb[8].mxu1 %vm410_vm2, %v646_v31  ;;  %vm1226_vm4 = vcmp.lt.s32.totalorder %v1225_v30, 16 }
 0x4dd   :  { %1669 = vmatprep.mubr.msk.f32.mxu1 %vm1847_vm0, %v1848_v49  ;;  %1793 = vmatpush3.bf16.msra.mxu1 %v1497_v40 }
 0x4de   :  { %1797 = vmatprep.subr.bf16.mxu1 %v1846_v44 }
 0x5af   :  { %v722_v35 = vpop.f32.mrb[8].mxu1 }
 0x5b0   :  { %v723_v36 = vadd.f32 %v722_v35, %v652_v34  ;;  %v1657_v37 = vpop.f32.mrb[9].mxu1 }
 0x5b2   :  { %v726_v38 = vmul.f32 0.2, %v723_v36 }
 0x5b4   :  { %v727_v39 = vmax.f32 %v723_v36, %v726_v38 }
 0x5b6   :  { %1663 = vmatmul.mubr.msk.f32.vlgmr.msra.gmra.mrb[4].mxu0 %vm410_vm2, %v727_v39 }
 0x5b7   :  { %1676 = vmatprep.mubr.msk.f32.mxu0 %vm1847_vm0, %v1848_v49  ;;  %1796 = vmatpush3.bf16.msra.mxu0 %v1498_v50 }
 0x5b8   :  { %1800 = vmatprep.subr.bf16.mxu0 %v1846_v44 }
 0x689   :  { %v803_v43 = vpop.f32.mrb[4].mxu0 }
 0x68a   :  { %v804_v45 = vadd.f32 %v803_v43, %v733_v42  ;;  %v1664_v46 = vpop.f32.mrb[5].mxu0 }
 0x68c   :  { %v807_v47 = vmul.f32 0.1, %v804_v45 }
 0x68e   :  { %v808_v48 = vadd.f32 %v807_v47, %v646_v31 }
 0x690   :  { %1670 = vmatmul.mubr.msk.f32.vlgmr.msra.gmra.mrb[10].mxu1 %vm410_vm2, %v808_v48 }
 0x691   :  { %1683 = vmatprep.mubr.msk.f32.mxu1 %vm1847_vm0, %v1848_v49  ;;  %1799 = vmatpush3.bf16.msra.mxu1 %v1499_v58 }
 0x692   :  { %1803 = vmatprep.subr.bf16.mxu1 %v1846_v44  ;;  %v975_v44 = vld [vmem:[%s2106_s1 + $0x1a8] sm:$0x1] }
 0x693   :  { %v976_v4 = vunpack.c.l.bf16 %v975_v44 }
 0x763   :  { %v884_v53 = vpop.f32.mrb[10].mxu1 }
 0x764   :  { %v885_v54 = vadd.f32 %v884_v53, %v814_v52  ;;  %v1671_v55 = vpop.f32.mrb[11].mxu1 }
 0x766   :  { %v888_v56 = vmul.f32 0.2, %v885_v54 }
 0x768   :  { %v889_v57 = vmax.f32 %v885_v54, %v888_v56 }
 0x76a   :  { %1677 = vmatmul.mubr.msk.f32.vlgmr.msra.gmra.mrb[6].mxu0 %vm410_vm2, %v889_v57 }
 0x76b   :  { %1690 = vmatprep.mubr.msk.f32.mxu0 %vm1847_vm0, %v1848_v49  ;;  %1802 = vmatpush3.bf16.msra.mxu0 %v1500_v2 }
 0x83d   :  { %v965_v61 = vpop.f32.mrb[6].mxu0 }
 0x83e   :  { %v966_v62 = vadd.f32 %v965_v61, %v895_v60  ;;  %v1678_v63 = vpop.f32.mrb[7].mxu0 }
 0x840   :  { %v969_v0 = vmul.f32 0.1, %v966_v62 }
 0x842   :  { %v970_v1 = vadd.f32 %v969_v0, %v808_v48 }
 0x844   :  { %1684 = vmatmul.mubr.msk.f32.vlgmr.msra.gmra.mrb[12].mxu1 %vm410_vm2, %v970_v1 }
 0x845   :  { %1697 = vmatprep.mubr.msk.f32.mxu1 %vm1847_vm0, %v1848_v49  ;;  %v1501_v49 = vld [vmem:[%s2106_s1 + $0x1c0] sm:$0xff]  }
 0x846   :  { %1805 = vmatpush3.bf16.msra.mxu1 %v1501_v49 }
 0x917   :  { %v1046_v5 = vpop.f32.mrb[12].mxu1 }
 0x918   :  { %v1047_v6 = vadd.f32 %v1046_v5, %v976_v4  ;;  %v1685_v7 = vpop.f32.mrb[13].mxu1 }
 0x91a   :  { %v1050_v8 = vmul.f32 0.2, %v1047_v6 }
 0x91c   :  { %v1051_v9 = vmax.f32 %v1047_v6, %v1050_v8 }
 0x91e   :  { %1691 = vmatmul.mubr.msk.f32.vlgmr.msra.gmra.mrb[8].mxu0 %vm410_vm2, %v1051_v9 }
 0x9f1   :  { %v1127_v12 = vpop.f32.mrb[8].mxu0 }
 0x9f2   :  { %v1128_v13 = vadd.f32 %v1127_v12, %v1057_v11  ;;  %v1692_v14 = vpop.f32.mrb[9].mxu0 }
 0x9f4   :  { %v1131_v15 = vmul.f32 0.1, %v1128_v13 }
 0x9f6   :  { %v1132_v16 = vadd.f32 %v1131_v15, %v970_v1 }
 0x9f8   :  { %1698 = vmatmul.mubr.msk.f32.vlgmr.msra.gmra.mrb[14].mxu1 %vm410_vm2, %v1132_v16 }
 0xacb   :  { %v1208_v19 = vpop.f32.mrb[14].mxu1 }
 0xacc   :  { %v1209_v20 = vadd.f32 %v1208_v19, %v1138_v18  ;;  %v1699_v21 = vpop.f32.mrb[15].mxu1 }
 0xace   :  { %v1213_v22 = vsel %vm1212_vm3, %v1209_v20, 0.0 }
 0xacf   :  { %1214 = vadd.xlane.f32.xlu0 %v1213_v22 }
 0xb5c   :  { %v1215_v23 = vpop.xlane.xlu0 %1214 }
 0xb5d   :  { %v1216_v24 = vrot.slane %v1215_v23, 4 }
 0xb5f   :  { %v1217_v25 = vadd.f32 %v1216_v24, %v1215_v23 }
 0xb61   :  { %v1218_v26 = vrot.slane %v1217_v25, 2 }
 0xb63   :  { %v1219_v27 = vadd.f32 %v1218_v26, %v1217_v25 }
 0xb65   :  { %v1220_v28 = vrot.slane %v1219_v27, 1 }
 0xb67   :  { %v1221_v29 = vadd.f32 %v1220_v28, %v1219_v27 }
 0xb69   :  { %1806 = vpush %v1221_v29 }
 0xb9a   :  { %s1807_s13 = spop %1806 }
 0xb9b   :  { %s1223_s1 = smul.f32 0.03125, %s1807_s13 }
 0xb9d   :  { %v1227_v31 = vstv %s1223_s1 }
 0xb9e   :  { %v1228_v32 = vsub.f32 %v1209_v20, %v1227_v31 }
 0xba0   :  { %v1229_v33 = vsel %vm1226_vm4, %v1228_v32, 0.0 }
 0xba1   :  { %v1230_v34 = vmul.f32 %v1229_v33, %v1229_v33 }
 0xba3   :  { %v1231_v35 = vsel %vm1212_vm3, %v1230_v34, 0.0 }
 0xba4   :  { %1232 = vadd.xlane.f32.xlu1 %v1231_v35 }
 0xc31   :  { %v1233_v36 = vpop.xlane.xlu1 %1232 }
 0xc32   :  { %v1234_v37 = vrot.slane %v1233_v36, 4 }
 0xc34   :  { %v1235_v38 = vadd.f32 %v1234_v37, %v1233_v36 }
 0xc36   :  { %v1236_v39 = vrot.slane %v1235_v38, 2 }
 0xc38   :  { %v1237_v40 = vadd.f32 %v1236_v39, %v1235_v38 }
 0xc3a   :  { %v1238_v41 = vrot.slane %v1237_v40, 1 }
 0xc3c   :  { %v1239_v42 = vadd.f32 %v1238_v41, %v1237_v40 }
 0xc3e   :  { %1808 = vpush %v1239_v42 }
 0xc6f   :  { %s1809_s14 = spop %1808 }
 0xc70   :  { %s1241_s15 = smul.f32 0.032258064, %s1809_s14 }
 0xc72   :  { %v1242_v3 = vstv %s1241_s15 }
 0xc73   :  { %1819 = vrcp.f32 %v1242_v3 }
 0xc7d   :  { %v1820_v43 = vpop.eup %1819 }
 0xc7e   :  { %1810 = vpush %v1820_v43 }
 0xcaf   :  { %s1811_s18 = spop %1810 }
 0xcb0   :  { %v1245_v45 = vstv %s1811_s18 }
 0xcb1   :  { %v1246_v46 = vmul.f32 %v1245_v45, %v1228_v32 }
 0xcb3   :  { %1247 = vst [vmem:[#allocation2] sm:$0x3] %v1246_v46 }
 0xcb4   :  { %1832 = shalt.err (!%p1829_p4)
}
 0xcb5   :  { %s1833_s21 = scalar_lea.hbm %s2107_s2, 32 }
 0xcb6   :  { %p1834_p5 = scmp.ne.s32.totalorder %s2107_s2, %s1833_s21  ;;  %p1837_p6 = scmp.lt.u32.totalorder %s1833_s21, %s2107_s2 }
 0xcb8   :  { %p1839_p7 = pnand %p1837_p6, %p1834_p5 }
 0xcba   :  { %1842 = shalt.err (!%p1839_p7)
}
 0xcbb   :  { %1257 = dma.vmem_to_hbm [thread:$0]  %s1255_s17, 32, %s2107_s2, [#allocation3]  }
 0xcbc   :  { %1843 = dma.done.wait [#allocation3], 32  }
 0xcbd   :  { %1844 = vsyncadd [#allocation3], 4294967264 }
 0xcbe   :  { %1261 = vsyncpa [#allocation3], 1 }

</bundles_post_ra>
